<compile_context>
chip_gen: v5e
topology: v5e:2x2
jax: 0.10.0
libtpu: 0.0.40
codegen_flags: <defaults>
</compile_context>

<pallas_src>
import jax
import jax.numpy as jnp
from jax.experimental import pallas as pl
from jax.experimental.pallas import tpu as pltpu


_PALLAS_MIN_BYTES = 1 << 23          # 8 MiB: below this, XLA's fused sum wins
_VMEM_BUDGET_BYTES = 20 * 1024 * 1024  # double-buffered in+out footprint target
_VMEM_LIMIT_BYTES = 32 * 1024 * 1024   # explicit scoped-VMEM limit (v7x-safe)


def _round_up(x: int, m: int) -> int:
    return ((x + m - 1) // m) * m


def _mixing_kernel(q_ref, o_ref):
    # q_ref: [TILE_ROWS, N]  -- batch rows on sublanes, agents on lanes.
    # o_ref: [TILE_ROWS, 1]  -- per-row sum (masked stores OK: output is N x
    #                           smaller than the input stream).
    x = q_ref[...].astype(jnp.float32)            # single block load
    o_ref[...] = jnp.sum(x, axis=1, keepdims=True).astype(o_ref.dtype)


def _pick_tile_rows(batch: int, n_agents: int) -> int:
    # VMEM bytes per row: input block lanes pad n_agents -> multiple of 128,
    # output block lanes pad 1 -> 128; both are double-buffered.
    padded_n = _round_up(max(n_agents, 1), 128)
    bytes_per_row = (padded_n + 128) * 4 * 2
    tile_max = max(8, (_VMEM_BUDGET_BYTES // bytes_per_row) // 8 * 8)
    if batch < 16:
        # Single block equal to the full first dim (allowed by the (8,128) rule).
        return batch
    # Keep >= 2 grid steps so v7x's two TensorCores both get work.
    return min(tile_max, _round_up((batch + 1) // 2, 8))


def _pallas_vdn_sum(q_local: jax.Array) -> jax.Array:
    batch, n_agents = q_local.shape
    tile_rows = _pick_tile_rows(batch, n_agents)
    grid = pl.cdiv(batch, tile_rows)

    out = pl.pallas_call(
        _mixing_kernel,
        out_shape=jax.ShapeDtypeStruct((batch, 1), q_local.dtype),
        grid_spec=pltpu.PrefetchScalarGridSpec(
            num_scalar_prefetch=0,
            grid=(grid,),
            # N equals the full last dim -> satisfies (8,128); last row-block may
            # be ragged, which is fine because the mapping is row-to-row.
            in_specs=[pl.BlockSpec((tile_rows, n_agents), lambda i: (i, 0))],
            out_specs=pl.BlockSpec((tile_rows, 1), lambda i: (i, 0)),
        ),
        compiler_params=pltpu.CompilerParams(
            dimension_semantics=("parallel",),
            vmem_limit_bytes=_VMEM_LIMIT_BYTES,
        ),
    )(q_local)

    return out[:, 0]


def mixing_net_forward(q_local: jax.Array, force_pallas: bool = False) -> jax.Array:
    """MixingNet.forward: sum over the agent axis (dim=1)."""
    if (not force_pallas
            and q_local.size * q_local.dtype.itemsize < _PALLAS_MIN_BYTES):
        # Small input: a custom call is pure launch/DMA overhead; XLA fuses the
        # row-sum into one HBM pass.  Accumulate in f32 for parity with the kernel.
        return jnp.sum(q_local, axis=1, dtype=jnp.float32).astype(q_local.dtype)
    return _pallas_vdn_sum(q_local)


def vdn_forward(q_local: jax.Array, dead_masking=None,
                force_pallas: bool = False) -> jax.Array:
    """VDN.forward: identical to MixingNet; dead_masking is unused (as in torch)."""
    del dead_masking
    return mixing_net_forward(q_local, force_pallas=force_pallas)


if __name__ == "__main__":
    key = jax.random.PRNGKey(0)

    # Case 1: small shape typical of the module (batch=8, n_agents=4) -> XLA path.
    q_small = jax.random.normal(key, (8, 4), dtype=jnp.float32)
    dead_masking = jnp.zeros((8, 4), dtype=jnp.float32)  # ignored, as in the module
    y_small = jax.block_until_ready(vdn_forward(q_small, dead_masking))
    ref_small = jnp.sum(q_small, axis=1)
    assert y_small.shape == ref_small.shape == (8,)
    assert jnp.allclose(y_small, ref_small, atol=1e-6, rtol=1e-6)

    # Case 2: same small shape forced through the Pallas kernel
    # (grid=1, block == full array -> exercises the equal-full-dim path).
    y_forced = jax.block_until_ready(mixing_net_forward(q_small, force_pallas=True))
    assert jnp.allclose(y_forced, ref_small, atol=1e-6, rtol=1e-6)

    # Case 3: larger batch forced through the Pallas kernel -> exercises the
    # multi-step "parallel" grid and the ragged last block (1000 rows, 2 steps).
    batch, n_agents = 1000, 4
    q_big = jax.random.normal(key, (batch, n_agents), dtype=jnp.float32)
    y_big = jax.block_until_ready(mixing_net_forward(q_big, force_pallas=True))
    ref_big = jnp.sum(q_big, axis=1)
    assert y_big.shape == ref_big.shape == (batch,)
    assert jnp.allclose(y_big, ref_big, atol=1e-5, rtol=1e-5)

    print("KERNEL_OK")
</pallas_src>

<mosaic_0001>
module attributes {stable_mosaic.version = 11 : i64} {
  func.func @_mixing_kernel(%arg0: i32, %arg1: memref<8x4xf32, #tpu.memory_space<vmem>>, %arg2: memref<8x1xf32, #tpu.memory_space<vmem>>) attributes {dimension_semantics = [#tpu.dimension_semantics<parallel>], iteration_bounds = array<i64: 1>, scalar_prefetch = 0 : i64, scratch_operands = 0 : i64, tpu.core_type = #tpu.core_type<tc>, window_params = [{transform_indices = @transform_0, window_bounds = array<i64: 8, 4>}, {transform_indices = @transform_1, window_bounds = array<i64: 8, 1>}]} {
    %c0 = arith.constant 0 : index
    %c0_0 = arith.constant 0 : index
    %0 = vector.load %arg1[%c0, %c0_0] : memref<8x4xf32, #tpu.memory_space<vmem>>, vector<8x4xf32>
    %cst = arith.constant dense<0.000000e+00> : vector<8xf32>
    %1 = vector.multi_reduction <add>, %0, %cst [1] : vector<8x4xf32> to vector<8xf32>
    %2 = vector.shape_cast %1 : vector<8xf32> to vector<8x1xf32>
    %c0_1 = arith.constant 0 : index
    %c0_2 = arith.constant 0 : index
    %3 = vector.load %arg2[%c0_1, %c0_2] : memref<8x1xf32, #tpu.memory_space<vmem>>, vector<8x1xf32>
    tpu.vector_store %arg2[%c0_1, %c0_2], %2 {strides = array<i32>} : memref<8x1xf32, #tpu.memory_space<vmem>>, vector<8x1xf32>,
    return
  }
  func.func @transform_0(%arg0: i32) -> (i32, i32) {
    %c0_i32 = arith.constant 0 : i32
    %c0_i32_0 = arith.constant 0 : i32
    return %arg0, %c0_i32 : i32, i32
  }
  func.func @transform_1(%arg0: i32) -> (i32, i32) {
    %c0_i32 = arith.constant 0 : i32
    %c0_i32_0 = arith.constant 0 : i32
    return %arg0, %c0_i32 : i32, i32
  }
}

</mosaic_0001>

<bundles_post_ra>
// kernel: tpu_custom_call.1
= control target key start
LH: loop header
LB: loop body
LE: loop exit
PB: predicated region body
PF: predicated region fallthrough
CT: control target
= control target key end

     0   :  { %vm9_vm0 = vcmask 31744   ;;  %vm13_vm1 = vcmask 7168   ;;  %s35_s0 = inlined_call_operand.vmem [shape: f32[8,4], index: 0, kind: input, shape index: {}]   ;;  %s36_s1 = inlined_call_operand.vmem [shape: f32[8,1], index: 1, kind: output, shape index: {}]  }
   0x1   :  { %v8_v0 = vld [vmem:[%s35_s0] sm:$0xff] }
   0x2   :  { %v10_v1 = vsel %vm9_vm0, %v8_v0, 0.0 }
   0x3   :  { %11 = vadd.xlane.f32.xlu0 %v10_v1 }
  0x76   :  { %v12_v2 = vpop.xlane.xlu0 %11 }
  0x77   :  { %14 = vst.msk [vmem:[%s36_s1] sm:$0xff] %vm13_vm1, %v12_v2 }

</bundles_post_ra>
